<compile_context>
chip_gen: v7x
topology: tpu7x:2x2x1
jax: 0.10.0
libtpu: 0.0.40
codegen_flags: <defaults>
</compile_context>

<pallas_src>
import functools

import numpy as np
import jax
import jax.numpy as jnp
from jax.experimental import pallas as pl
from jax.experimental.pallas import tpu as pltpu


def _ceil_to(x, m):
    return -(-x // m) * m


_PLACE = 128  # lane offset at which the flat image sits inside the xs scratch


@functools.lru_cache(maxsize=None)
def _pool_sel_np(h, w):
    """0/1 matrix (h*w, h*w//4): column j selects flat pos 2*w*(j//wo)+2*(j%wo)."""
    m = h * w
    wo = w // 2
    mo = m // 4
    q = np.arange(m)[:, None]
    j = np.arange(mo)[None, :]
    target = (2 * w) * (j // wo) + 2 * (j % wo)
    return np.asarray(q == target, dtype=np.float32)


def _make_backbone_kernel(H, W, c_in, c_mid, c_out):
    """Fused (conv3x3 -> relu -> pool2) x 2 kernel for one NCHW image."""
    assert H % 4 == 0 and W % 4 == 0
    assert (W & (W - 1)) == 0, "row width must be a power of two (lane masks)"
    H2, W2 = H // 2, W // 2            # stage-2 spatial size
    M1, M2 = H * W, H2 * W2
    CP1 = _ceil_to(c_in, 8)            # stage-1 Cin padded to a sublane tile
    CP2 = _ceil_to(c_mid, 8)           # 16 (already aligned)

    def conv_relu_pool(xs_ref, col_ref, ys_ref, w_ref, b_ref, sel_ref,
                       x_val, c, cp, ws):
        m = xs_ref.shape[1] - 2 * _PLACE          # = H*W of this stage

        # ---- place the flat image into the zero-slacked scratch ----------
        xs_ref[...] = jnp.zeros_like(xs_ref)
        xs_ref[0:c, _PLACE:_PLACE + m] = x_val                     # (c, m)

        # ---- left/right edge masks over flattened output positions -------
        wpos = jax.lax.broadcasted_iota(jnp.int32, (cp, m), 1) & (ws - 1)
        not_left = wpos != 0           # kills kx==0 taps at w == 0
        not_right = wpos != ws - 1     # kills kx==2 taps at w == ws-1

        # ---- im2col: 9 lane-shifted (+masked) copies stacked on sublanes --
        for ky in range(3):
            for kx in range(3):
                t = ky * 3 + kx
                s = (ky - 1) * ws + (kx - 1)
                slab = xs_ref[:, _PLACE + s:_PLACE + s + m]        # (cp, m)
                if kx == 0:
                    slab = jnp.where(not_left, slab, 0.0)
                elif kx == 2:
                    slab = jnp.where(not_right, slab, 0.0)
                col_ref[t * cp:(t + 1) * cp, :] = slab

        # ---- conv == ONE MXU matmul, then bias + ReLU ---------------------
        y = jnp.dot(w_ref[...], col_ref[...],
                    preferred_element_type=jnp.float32)            # (cout, m)
        y = jnp.maximum(y + b_ref[...], 0.0)

        # ---- 2x2/2 max-pool: shifted maxes + 0/1 compaction matmul --------
        ys_ref[...] = jnp.zeros_like(ys_ref)   # keep over-reads finite (NaN*0 hazard)
        ys_ref[:, 0:m] = y
        u = jnp.maximum(
            jnp.maximum(ys_ref[:, 0:m], ys_ref[:, 1:m + 1]),
            jnp.maximum(ys_ref[:, ws:ws + m], ys_ref[:, ws + 1:ws + m + 1]))
        # u[:, 2*ws*ho + 2*wo] is the pooled value at (ho, wo); compact to
        # (cout, m//4) with the precomputed 0/1 selection matmul (MXU work).
        return jnp.dot(u, sel_ref[...], preferred_element_type=jnp.float32)

    def kernel(x_ref, w1_ref, b1_ref, w2_ref, b2_ref, sel1_ref, sel2_ref,
               o_ref, xs1, col1, ys1, xs2, col2, ys2):
        x1 = x_ref[0]                                              # (c_in, M1)
        p1 = conv_relu_pool(xs1, col1, ys1, w1_ref, b1_ref, sel1_ref,
                            x1, c_in, CP1, W)                      # (c_mid, M2)
        p2 = conv_relu_pool(xs2, col2, ys2, w2_ref, b2_ref, sel2_ref,
                            p1, c_mid, CP2, W2)                    # (c_out, M3)
        o_ref[0] = p2.astype(o_ref.dtype)

    scratch_shapes = [
        pltpu.VMEM((CP1, M1 + 2 * _PLACE), jnp.float32),   # xs1 (slacked image)
        pltpu.VMEM((9 * CP1, M1), jnp.float32),            # col1 (im2col slab)
        pltpu.VMEM((c_mid, M1 + 128), jnp.float32),        # ys1 (pool scratch)
        pltpu.VMEM((CP2, M2 + 2 * _PLACE), jnp.float32),   # xs2
        pltpu.VMEM((9 * CP2, M2), jnp.float32),            # col2
        pltpu.VMEM((c_out, M2 + 128), jnp.float32),        # ys2
    ]
    return kernel, scratch_shapes


def init_params(key):
    """PyTorch-layout parameters: conv weights (Cout, Cin, 3, 3), biases (Cout,)."""
    k1, k2, k3, k4 = jax.random.split(key, 4)
    return {
        "w1": jax.random.normal(k1, (16, 3, 3, 3), jnp.float32) * 0.1,
        "b1": jax.random.normal(k2, (16,), jnp.float32) * 0.1,
        "w2": jax.random.normal(k3, (8, 16, 3, 3), jnp.float32) * 0.1,
        "b2": jax.random.normal(k4, (8,), jnp.float32) * 0.1,
    }


def pack_params(params):
    """One-time repack of torch-layout params into im2col matmul form."""
    def pack_w(w):
        c_out, c_in = w.shape[0], w.shape[1]
        cp = _ceil_to(c_in, 8)
        wt = jnp.transpose(w, (0, 2, 3, 1))                  # (Cout, ky, kx, Cin)
        wt = jnp.pad(wt, ((0, 0), (0, 0), (0, 0), (0, cp - c_in)))
        return wt.reshape(c_out, 9 * cp)                     # row (ky*3+kx)*cp+ci
    return {
        "w1m": pack_w(params["w1"]),
        "b1m": params["b1"].reshape(-1, 1),
        "w2m": pack_w(params["w2"]),
        "b2m": params["b2"].reshape(-1, 1),
    }


@jax.jit
def backbone_forward(x, packed):
    """x: (N, 3, H, W) float32 NCHW  ->  (N, 8, H//4, W//4) float32 NCHW."""
    n, c_in, h, w = x.shape
    c_mid = packed["w1m"].shape[0]
    c_out = packed["w2m"].shape[0]
    h3, w3 = h // 4, w // 4
    m1, m3 = h * w, h3 * w3

    kernel, scratch_shapes = _make_backbone_kernel(h, w, c_in, c_mid, c_out)

    # Precomputed 0/1 pool-selection matrices (trace-time constants).
    sel1 = _pool_sel_np(h, w)                  # (m1, m1//4)
    sel2 = _pool_sel_np(h // 2, w // 2)        # (m2, m2//4)

    x_flat = x.reshape(n, c_in, m1)            # contiguous reshape: free bitcast

    out_flat = pl.pallas_call(
        kernel,
        out_shape=jax.ShapeDtypeStruct((n, c_out, m3), x.dtype),
        grid_spec=pltpu.PrefetchScalarGridSpec(
            num_scalar_prefetch=0,
            grid=(n,),
            in_specs=[
                pl.BlockSpec((1, c_in, m1), lambda i: (i, 0, 0)),
                pl.BlockSpec(packed["w1m"].shape, lambda i: (0, 0)),
                pl.BlockSpec(packed["b1m"].shape, lambda i: (0, 0)),
                pl.BlockSpec(packed["w2m"].shape, lambda i: (0, 0)),
                pl.BlockSpec(packed["b2m"].shape, lambda i: (0, 0)),
                pl.BlockSpec(sel1.shape, lambda i: (0, 0)),
                pl.BlockSpec(sel2.shape, lambda i: (0, 0)),
            ],
            out_specs=pl.BlockSpec((1, c_out, m3), lambda i: (i, 0, 0)),
            scratch_shapes=scratch_shapes,
        ),
        compiler_params=pltpu.CompilerParams(
            dimension_semantics=("parallel",)),
    )(x_flat, packed["w1m"], packed["b1m"], packed["w2m"], packed["b2m"],
      sel1, sel2)

    return out_flat.reshape(n, c_out, h3, w3)  # trailing split: free bitcast


def _reference_forward(x, params):
    """Pure-JAX reference (XLA conv / reduce_window) in NCHW."""
    def stage(y, w, b):
        y = jax.lax.conv_general_dilated(
            y, w, window_strides=(1, 1), padding="SAME",
            dimension_numbers=("NCHW", "OIHW", "NCHW"))
        y = jax.nn.relu(y + b[None, :, None, None])
        return jax.lax.reduce_window(
            y, -jnp.inf, jax.lax.max,
            window_dimensions=(1, 1, 2, 2), window_strides=(1, 1, 2, 2),
            padding="VALID")
    y = stage(x, params["w1"], params["b1"])
    y = stage(y, params["w2"], params["b2"])
    return y


if __name__ == "__main__":
    key = jax.random.PRNGKey(0)
    k_x, k_p = jax.random.split(key)

    # Input: batch=2, channels=3 (fixed by conv1), spatial 16x16, NCHW.
    x = jax.random.normal(k_x, (2, 3, 16, 16), jnp.float32)
    params = init_params(k_p)
    packed = pack_params(params)

    out = jax.block_until_ready(backbone_forward(x, packed))
    assert out.shape == (2, 8, 4, 4), out.shape

    ref = _reference_forward(x, params)
    max_err = float(jnp.max(jnp.abs(out - ref)))
    assert jnp.allclose(out, ref, rtol=1e-4, atol=1e-4), max_err

    print("KERNEL_OK")
</pallas_src>

<mosaic_0001>
module attributes {stable_mosaic.version = 11 : i64} {
  func.func @kernel(%arg0: i32, %arg1: memref<1x3x256xf32, #tpu.memory_space<vmem>>, %arg2: memref<16x72xf32, #tpu.memory_space<vmem>>, %arg3: memref<16x1xf32, #tpu.memory_space<vmem>>, %arg4: memref<8x144xf32, #tpu.memory_space<vmem>>, %arg5: memref<8x1xf32, #tpu.memory_space<vmem>>, %arg6: memref<256x64xf32, #tpu.memory_space<vmem>>, %arg7: memref<64x16xf32, #tpu.memory_space<vmem>>, %arg8: memref<1x8x16xf32, #tpu.memory_space<vmem>>, %arg9: memref<8x512xf32, #tpu.memory_space<vmem>>, %arg10: memref<72x256xf32, #tpu.memory_space<vmem>>, %arg11: memref<16x384xf32, #tpu.memory_space<vmem>>, %arg12: memref<16x320xf32, #tpu.memory_space<vmem>>, %arg13: memref<144x64xf32, #tpu.memory_space<vmem>>, %arg14: memref<8x192xf32, #tpu.memory_space<vmem>>) attributes {dimension_semantics = [#tpu.dimension_semantics<parallel>], iteration_bounds = array<i64: 2>, scalar_prefetch = 0 : i64, scratch_operands = 6 : i64, tpu.core_type = #tpu.core_type<tc>, window_params = [{transform_indices = @transform_0, window_bounds = array<i64: 1, 3, 256>}, {pipeline_mode = #tpu.pipeline_mode<synchronous>, transform_indices = @transform_1, window_bounds = array<i64: 16, 72>}, {pipeline_mode = #tpu.pipeline_mode<synchronous>, transform_indices = @transform_2, window_bounds = array<i64: 16, 1>}, {pipeline_mode = #tpu.pipeline_mode<synchronous>, transform_indices = @transform_3, window_bounds = array<i64: 8, 144>}, {pipeline_mode = #tpu.pipeline_mode<synchronous>, transform_indices = @transform_4, window_bounds = array<i64: 8, 1>}, {pipeline_mode = #tpu.pipeline_mode<synchronous>, transform_indices = @transform_5, window_bounds = array<i64: 256, 64>}, {pipeline_mode = #tpu.pipeline_mode<synchronous>, transform_indices = @transform_6, window_bounds = array<i64: 64, 16>}, {transform_indices = @transform_7, window_bounds = array<i64: 1, 8, 16>}]} {
    %c0 = arith.constant 0 : index
    %c0_0 = arith.constant 0 : index
    %c0_1 = arith.constant 0 : index
    %0 = vector.load %arg1[%c0, %c0_0, %c0_1] : memref<1x3x256xf32, #tpu.memory_space<vmem>>, vector<1x3x256xf32>
    %1 = vector.shape_cast %0 : vector<1x3x256xf32> to vector<3x256xf32>
    %cst = arith.constant 0.000000e+00 : f32
    %2 = vector.broadcast %cst : f32 to vector<8x512xf32>
    %c0_2 = arith.constant 0 : index
    %c0_3 = arith.constant 0 : index
    %3 = vector.load %arg9[%c0_2, %c0_3] : memref<8x512xf32, #tpu.memory_space<vmem>>, vector<8x512xf32>
    tpu.vector_store %arg9[%c0_2, %c0_3], %2 {strides = array<i32>} : memref<8x512xf32, #tpu.memory_space<vmem>>, vector<8x512xf32>,
    %c0_4 = arith.constant 0 : index
    %c128 = arith.constant 128 : index
    %4 = vector.load %arg9[%c0_4, %c128] : memref<8x512xf32, #tpu.memory_space<vmem>>, vector<3x256xf32>
    tpu.vector_store %arg9[%c0_4, %c128], %1 {strides = array<i32>} : memref<8x512xf32, #tpu.memory_space<vmem>>, vector<3x256xf32>,
    %5 = tpu.iota {dimensions = array<i32: 1>} : vector<8x256xi32>
    %c15_i32 = arith.constant 15 : i32
    %6 = vector.broadcast %c15_i32 : i32 to vector<8x256xi32>
    %7 = arith.andi %5, %6 : vector<8x256xi32>
    %c0_i32 = arith.constant 0 : i32
    %8 = vector.broadcast %c0_i32 : i32 to vector<8x256xi32>
    %9 = arith.cmpi ne, %7, %8 : vector<8x256xi32>
    %c15_i32_5 = arith.constant 15 : i32
    %10 = vector.broadcast %c15_i32_5 : i32 to vector<8x256xi32>
    %11 = arith.cmpi ne, %7, %10 : vector<8x256xi32>
    %c0_6 = arith.constant 0 : index
    %c111 = arith.constant 111 : index
    %12 = vector.load %arg9[%c0_6, %c111] : memref<8x512xf32, #tpu.memory_space<vmem>>, vector<8x256xf32>
    %cst_7 = arith.constant 0.000000e+00 : f32
    %13 = vector.broadcast %cst_7 : f32 to vector<8x256xf32>
    %14 = arith.select %9, %12, %13 : vector<8x256xi1>, vector<8x256xf32>
    %c0_8 = arith.constant 0 : index
    %c0_9 = arith.constant 0 : index
    %15 = vector.load %arg10[%c0_8, %c0_9] : memref<72x256xf32, #tpu.memory_space<vmem>>, vector<8x256xf32>
    tpu.vector_store %arg10[%c0_8, %c0_9], %14 {strides = array<i32>} : memref<72x256xf32, #tpu.memory_space<vmem>>, vector<8x256xf32>,
    %c0_10 = arith.constant 0 : index
    %c112 = arith.constant 112 : index
    %16 = vector.load %arg9[%c0_10, %c112] : memref<8x512xf32, #tpu.memory_space<vmem>>, vector<8x256xf32>
    %c8 = arith.constant 8 : index
    %c0_11 = arith.constant 0 : index
    %17 = vector.load %arg10[%c8, %c0_11] : memref<72x256xf32, #tpu.memory_space<vmem>>, vector<8x256xf32>
    tpu.vector_store %arg10[%c8, %c0_11], %16 {strides = array<i32>} : memref<72x256xf32, #tpu.memory_space<vmem>>, vector<8x256xf32>,
    %c0_12 = arith.constant 0 : index
    %c113 = arith.constant 113 : index
    %18 = vector.load %arg9[%c0_12, %c113] : memref<8x512xf32, #tpu.memory_space<vmem>>, vector<8x256xf32>
    %cst_13 = arith.constant 0.000000e+00 : f32
    %19 = vector.broadcast %cst_13 : f32 to vector<8x256xf32>
    %20 = arith.select %11, %18, %19 : vector<8x256xi1>, vector<8x256xf32>
    %c16 = arith.constant 16 : index
    %c0_14 = arith.constant 0 : index
    %21 = vector.load %arg10[%c16, %c0_14] : memref<72x256xf32, #tpu.memory_space<vmem>>, vector<8x256xf32>
    tpu.vector_store %arg10[%c16, %c0_14], %20 {strides = array<i32>} : memref<72x256xf32, #tpu.memory_space<vmem>>, vector<8x256xf32>,
    %c0_15 = arith.constant 0 : index
    %c127 = arith.constant 127 : index
    %22 = vector.load %arg9[%c0_15, %c127] : memref<8x512xf32, #tpu.memory_space<vmem>>, vector<8x256xf32>
    %cst_16 = arith.constant 0.000000e+00 : f32
    %23 = vector.broadcast %cst_16 : f32 to vector<8x256xf32>
    %24 = arith.select %9, %22, %23 : vector<8x256xi1>, vector<8x256xf32>
    %c24 = arith.constant 24 : index
    %c0_17 = arith.constant 0 : index
    %25 = vector.load %arg10[%c24, %c0_17] : memref<72x256xf32, #tpu.memory_space<vmem>>, vector<8x256xf32>
    tpu.vector_store %arg10[%c24, %c0_17], %24 {strides = array<i32>} : memref<72x256xf32, #tpu.memory_space<vmem>>, vector<8x256xf32>,
    %c0_18 = arith.constant 0 : index
    %c128_19 = arith.constant 128 : index
    %26 = vector.load %arg9[%c0_18, %c128_19] : memref<8x512xf32, #tpu.memory_space<vmem>>, vector<8x256xf32>
    %c32 = arith.constant 32 : index
    %c0_20 = arith.constant 0 : index
    %27 = vector.load %arg10[%c32, %c0_20] : memref<72x256xf32, #tpu.memory_space<vmem>>, vector<8x256xf32>
    tpu.vector_store %arg10[%c32, %c0_20], %26 {strides = array<i32>} : memref<72x256xf32, #tpu.memory_space<vmem>>, vector<8x256xf32>,
    %c0_21 = arith.constant 0 : index
    %c129 = arith.constant 129 : index
    %28 = vector.load %arg9[%c0_21, %c129] : memref<8x512xf32, #tpu.memory_space<vmem>>, vector<8x256xf32>
    %cst_22 = arith.constant 0.000000e+00 : f32
    %29 = vector.broadcast %cst_22 : f32 to vector<8x256xf32>
    %30 = arith.select %11, %28, %29 : vector<8x256xi1>, vector<8x256xf32>
    %c40 = arith.constant 40 : index
    %c0_23 = arith.constant 0 : index
    %31 = vector.load %arg10[%c40, %c0_23] : memref<72x256xf32, #tpu.memory_space<vmem>>, vector<8x256xf32>
    tpu.vector_store %arg10[%c40, %c0_23], %30 {strides = array<i32>} : memref<72x256xf32, #tpu.memory_space<vmem>>, vector<8x256xf32>,
    %c0_24 = arith.constant 0 : index
    %c143 = arith.constant 143 : index
    %32 = vector.load %arg9[%c0_24, %c143] : memref<8x512xf32, #tpu.memory_space<vmem>>, vector<8x256xf32>
    %cst_25 = arith.constant 0.000000e+00 : f32
    %33 = vector.broadcast %cst_25 : f32 to vector<8x256xf32>
    %34 = arith.select %9, %32, %33 : vector<8x256xi1>, vector<8x256xf32>
    %c48 = arith.constant 48 : index
    %c0_26 = arith.constant 0 : index
    %35 = vector.load %arg10[%c48, %c0_26] : memref<72x256xf32, #tpu.memory_space<vmem>>, vector<8x256xf32>
    tpu.vector_store %arg10[%c48, %c0_26], %34 {strides = array<i32>} : memref<72x256xf32, #tpu.memory_space<vmem>>, vector<8x256xf32>,
    %c0_27 = arith.constant 0 : index
    %c144 = arith.constant 144 : index
    %36 = vector.load %arg9[%c0_27, %c144] : memref<8x512xf32, #tpu.memory_space<vmem>>, vector<8x256xf32>
    %c56 = arith.constant 56 : index
    %c0_28 = arith.constant 0 : index
    %37 = vector.load %arg10[%c56, %c0_28] : memref<72x256xf32, #tpu.memory_space<vmem>>, vector<8x256xf32>
    tpu.vector_store %arg10[%c56, %c0_28], %36 {strides = array<i32>} : memref<72x256xf32, #tpu.memory_space<vmem>>, vector<8x256xf32>,
    %c0_29 = arith.constant 0 : index
    %c145 = arith.constant 145 : index
    %38 = vector.load %arg9[%c0_29, %c145] : memref<8x512xf32, #tpu.memory_space<vmem>>, vector<8x256xf32>
    %cst_30 = arith.constant 0.000000e+00 : f32
    %39 = vector.broadcast %cst_30 : f32 to vector<8x256xf32>
    %40 = arith.select %11, %38, %39 : vector<8x256xi1>, vector<8x256xf32>
    %c64 = arith.constant 64 : index
    %c0_31 = arith.constant 0 : index
    %41 = vector.load %arg10[%c64, %c0_31] : memref<72x256xf32, #tpu.memory_space<vmem>>, vector<8x256xf32>
    tpu.vector_store %arg10[%c64, %c0_31], %40 {strides = array<i32>} : memref<72x256xf32, #tpu.memory_space<vmem>>, vector<8x256xf32>,
    %c0_32 = arith.constant 0 : index
    %c0_33 = arith.constant 0 : index
    %42 = vector.load %arg2[%c0_32, %c0_33] : memref<16x72xf32, #tpu.memory_space<vmem>>, vector<16x72xf32>
    %c0_34 = arith.constant 0 : index
    %c0_35 = arith.constant 0 : index
    %43 = vector.load %arg10[%c0_34, %c0_35] : memref<72x256xf32, #tpu.memory_space<vmem>>, vector<72x256xf32>
    %cst_36 = arith.constant dense<0.000000e+00> : vector<16x256xf32>
    %44 = tpu.matmul %42, %43, %cst_36 {dimension_numbers = #tpu.dot_dimension_numbers<[1], [0], [0], [1], [0, 0, 1, 1], [], []>} : vector<16x72xf32>, vector<72x256xf32>, vector<16x256xf32> -> vector<16x256xf32>
    %c0_37 = arith.constant 0 : index
    %c0_38 = arith.constant 0 : index
    %45 = vector.load %arg3[%c0_37, %c0_38] : memref<16x1xf32, #tpu.memory_space<vmem>>, vector<16x1xf32>
    %46 = vector.broadcast %45 : vector<16x1xf32> to vector<16x256xf32>
    %47 = arith.addf %44, %46 : vector<16x256xf32>
    %cst_39 = arith.constant 0.000000e+00 : f32
    %48 = vector.broadcast %cst_39 : f32 to vector<16x256xf32>
    %49 = arith.maximumf %47, %48 : vector<16x256xf32>
    %cst_40 = arith.constant 0.000000e+00 : f32
    %50 = vector.broadcast %cst_40 : f32 to vector<16x384xf32>
    %c0_41 = arith.constant 0 : index
    %c0_42 = arith.constant 0 : index
    %51 = vector.load %arg11[%c0_41, %c0_42] : memref<16x384xf32, #tpu.memory_space<vmem>>, vector<16x384xf32>
    tpu.vector_store %arg11[%c0_41, %c0_42], %50 {strides = array<i32>} : memref<16x384xf32, #tpu.memory_space<vmem>>, vector<16x384xf32>,
    %c0_43 = arith.constant 0 : index
    %c0_44 = arith.constant 0 : index
    %52 = vector.load %arg11[%c0_43, %c0_44] : memref<16x384xf32, #tpu.memory_space<vmem>>, vector<16x256xf32>
    tpu.vector_store %arg11[%c0_43, %c0_44], %49 {strides = array<i32>} : memref<16x384xf32, #tpu.memory_space<vmem>>, vector<16x256xf32>,
    %c0_45 = arith.constant 0 : index
    %c0_46 = arith.constant 0 : index
    %53 = vector.load %arg11[%c0_45, %c0_46] : memref<16x384xf32, #tpu.memory_space<vmem>>, vector<16x256xf32>
    %c0_47 = arith.constant 0 : index
    %c1 = arith.constant 1 : index
    %54 = vector.load %arg11[%c0_47, %c1] : memref<16x384xf32, #tpu.memory_space<vmem>>, vector<16x256xf32>
    %55 = arith.maximumf %53, %54 : vector<16x256xf32>
    %c0_48 = arith.constant 0 : index
    %c16_49 = arith.constant 16 : index
    %56 = vector.load %arg11[%c0_48, %c16_49] : memref<16x384xf32, #tpu.memory_space<vmem>>, vector<16x256xf32>
    %c0_50 = arith.constant 0 : index
    %c17 = arith.constant 17 : index
    %57 = vector.load %arg11[%c0_50, %c17] : memref<16x384xf32, #tpu.memory_space<vmem>>, vector<16x256xf32>
    %58 = arith.maximumf %56, %57 : vector<16x256xf32>
    %59 = arith.maximumf %55, %58 : vector<16x256xf32>
    %c0_51 = arith.constant 0 : index
    %c0_52 = arith.constant 0 : index
    %60 = vector.load %arg6[%c0_51, %c0_52] : memref<256x64xf32, #tpu.memory_space<vmem>>, vector<256x64xf32>
    %cst_53 = arith.constant dense<0.000000e+00> : vector<16x64xf32>
    %61 = tpu.matmul %59, %60, %cst_53 {dimension_numbers = #tpu.dot_dimension_numbers<[1], [0], [0], [1], [0, 0, 1, 1], [], []>} : vector<16x256xf32>, vector<256x64xf32>, vector<16x64xf32> -> vector<16x64xf32>
    %cst_54 = arith.constant 0.000000e+00 : f32
    %62 = vector.broadcast %cst_54 : f32 to vector<16x320xf32>
    %c0_55 = arith.constant 0 : index
    %c0_56 = arith.constant 0 : index
    %63 = vector.load %arg12[%c0_55, %c0_56] : memref<16x320xf32, #tpu.memory_space<vmem>>, vector<16x320xf32>
    tpu.vector_store %arg12[%c0_55, %c0_56], %62 {strides = array<i32>} : memref<16x320xf32, #tpu.memory_space<vmem>>, vector<16x320xf32>,
    %c0_57 = arith.constant 0 : index
    %c128_58 = arith.constant 128 : index
    %64 = vector.load %arg12[%c0_57, %c128_58] : memref<16x320xf32, #tpu.memory_space<vmem>>, vector<16x64xf32>
    tpu.vector_store %arg12[%c0_57, %c128_58], %61 {strides = array<i32>} : memref<16x320xf32, #tpu.memory_space<vmem>>, vector<16x64xf32>,
    %65 = tpu.iota {dimensions = array<i32: 1>} : vector<16x64xi32>
    %c7_i32 = arith.constant 7 : i32
    %66 = vector.broadcast %c7_i32 : i32 to vector<16x64xi32>
    %67 = arith.andi %65, %66 : vector<16x64xi32>
    %c0_i32_59 = arith.constant 0 : i32
    %68 = vector.broadcast %c0_i32_59 : i32 to vector<16x64xi32>
    %69 = arith.cmpi ne, %67, %68 : vector<16x64xi32>
    %c7_i32_60 = arith.constant 7 : i32
    %70 = vector.broadcast %c7_i32_60 : i32 to vector<16x64xi32>
    %71 = arith.cmpi ne, %67, %70 : vector<16x64xi32>
    %c0_61 = arith.constant 0 : index
    %c119 = arith.constant 119 : index
    %72 = vector.load %arg12[%c0_61, %c119] : memref<16x320xf32, #tpu.memory_space<vmem>>, vector<16x64xf32>
    %cst_62 = arith.constant 0.000000e+00 : f32
    %73 = vector.broadcast %cst_62 : f32 to vector<16x64xf32>
    %74 = arith.select %69, %72, %73 : vector<16x64xi1>, vector<16x64xf32>
    %c0_63 = arith.constant 0 : index
    %c0_64 = arith.constant 0 : index
    %75 = vector.load %arg13[%c0_63, %c0_64] : memref<144x64xf32, #tpu.memory_space<vmem>>, vector<16x64xf32>
    tpu.vector_store %arg13[%c0_63, %c0_64], %74 {strides = array<i32>} : memref<144x64xf32, #tpu.memory_space<vmem>>, vector<16x64xf32>,
    %c0_65 = arith.constant 0 : index
    %c120 = arith.constant 120 : index
    %76 = vector.load %arg12[%c0_65, %c120] : memref<16x320xf32, #tpu.memory_space<vmem>>, vector<16x64xf32>
    %c16_66 = arith.constant 16 : index
    %c0_67 = arith.constant 0 : index
    %77 = vector.load %arg13[%c16_66, %c0_67] : memref<144x64xf32, #tpu.memory_space<vmem>>, vector<16x64xf32>
    tpu.vector_store %arg13[%c16_66, %c0_67], %76 {strides = array<i32>} : memref<144x64xf32, #tpu.memory_space<vmem>>, vector<16x64xf32>,
    %c0_68 = arith.constant 0 : index
    %c121 = arith.constant 121 : index
    %78 = vector.load %arg12[%c0_68, %c121] : memref<16x320xf32, #tpu.memory_space<vmem>>, vector<16x64xf32>
    %cst_69 = arith.constant 0.000000e+00 : f32
    %79 = vector.broadcast %cst_69 : f32 to vector<16x64xf32>
    %80 = arith.select %71, %78, %79 : vector<16x64xi1>, vector<16x64xf32>
    %c32_70 = arith.constant 32 : index
    %c0_71 = arith.constant 0 : index
    %81 = vector.load %arg13[%c32_70, %c0_71] : memref<144x64xf32, #tpu.memory_space<vmem>>, vector<16x64xf32>
    tpu.vector_store %arg13[%c32_70, %c0_71], %80 {strides = array<i32>} : memref<144x64xf32, #tpu.memory_space<vmem>>, vector<16x64xf32>,
    %c0_72 = arith.constant 0 : index
    %c127_73 = arith.constant 127 : index
    %82 = vector.load %arg12[%c0_72, %c127_73] : memref<16x320xf32, #tpu.memory_space<vmem>>, vector<16x64xf32>
    %cst_74 = arith.constant 0.000000e+00 : f32
    %83 = vector.broadcast %cst_74 : f32 to vector<16x64xf32>
    %84 = arith.select %69, %82, %83 : vector<16x64xi1>, vector<16x64xf32>
    %c48_75 = arith.constant 48 : index
    %c0_76 = arith.constant 0 : index
    %85 = vector.load %arg13[%c48_75, %c0_76] : memref<144x64xf32, #tpu.memory_space<vmem>>, vector<16x64xf32>
    tpu.vector_store %arg13[%c48_75, %c0_76], %84 {strides = array<i32>} : memref<144x64xf32, #tpu.memory_space<vmem>>, vector<16x64xf32>,
    %c0_77 = arith.constant 0 : index
    %c128_78 = arith.constant 128 : index
    %86 = vector.load %arg12[%c0_77, %c128_78] : memref<16x320xf32, #tpu.memory_space<vmem>>, vector<16x64xf32>
    %c64_79 = arith.constant 64 : index
    %c0_80 = arith.constant 0 : index
    %87 = vector.load %arg13[%c64_79, %c0_80] : memref<144x64xf32, #tpu.memory_space<vmem>>, vector<16x64xf32>
    tpu.vector_store %arg13[%c64_79, %c0_80], %86 {strides = array<i32>} : memref<144x64xf32, #tpu.memory_space<vmem>>, vector<16x64xf32>,
    %c0_81 = arith.constant 0 : index
    %c129_82 = arith.constant 129 : index
    %88 = vector.load %arg12[%c0_81, %c129_82] : memref<16x320xf32, #tpu.memory_space<vmem>>, vector<16x64xf32>
    %cst_83 = arith.constant 0.000000e+00 : f32
    %89 = vector.broadcast %cst_83 : f32 to vector<16x64xf32>
    %90 = arith.select %71, %88, %89 : vector<16x64xi1>, vector<16x64xf32>
    %c80 = arith.constant 80 : index
    %c0_84 = arith.constant 0 : index
    %91 = vector.load %arg13[%c80, %c0_84] : memref<144x64xf32, #tpu.memory_space<vmem>>, vector<16x64xf32>
    tpu.vector_store %arg13[%c80, %c0_84], %90 {strides = array<i32>} : memref<144x64xf32, #tpu.memory_space<vmem>>, vector<16x64xf32>,
    %c0_85 = arith.constant 0 : index
    %c135 = arith.constant 135 : index
    %92 = vector.load %arg12[%c0_85, %c135] : memref<16x320xf32, #tpu.memory_space<vmem>>, vector<16x64xf32>
    %cst_86 = arith.constant 0.000000e+00 : f32
    %93 = vector.broadcast %cst_86 : f32 to vector<16x64xf32>
    %94 = arith.select %69, %92, %93 : vector<16x64xi1>, vector<16x64xf32>
    %c96 = arith.constant 96 : index
    %c0_87 = arith.constant 0 : index
    %95 = vector.load %arg13[%c96, %c0_87] : memref<144x64xf32, #tpu.memory_space<vmem>>, vector<16x64xf32>
    tpu.vector_store %arg13[%c96, %c0_87], %94 {strides = array<i32>} : memref<144x64xf32, #tpu.memory_space<vmem>>, vector<16x64xf32>,
    %c0_88 = arith.constant 0 : index
    %c136 = arith.constant 136 : index
    %96 = vector.load %arg12[%c0_88, %c136] : memref<16x320xf32, #tpu.memory_space<vmem>>, vector<16x64xf32>
    %c112_89 = arith.constant 112 : index
    %c0_90 = arith.constant 0 : index
    %97 = vector.load %arg13[%c112_89, %c0_90] : memref<144x64xf32, #tpu.memory_space<vmem>>, vector<16x64xf32>
    tpu.vector_store %arg13[%c112_89, %c0_90], %96 {strides = array<i32>} : memref<144x64xf32, #tpu.memory_space<vmem>>, vector<16x64xf32>,
    %c0_91 = arith.constant 0 : index
    %c137 = arith.constant 137 : index
    %98 = vector.load %arg12[%c0_91, %c137] : memref<16x320xf32, #tpu.memory_space<vmem>>, vector<16x64xf32>
    %cst_92 = arith.constant 0.000000e+00 : f32
    %99 = vector.broadcast %cst_92 : f32 to vector<16x64xf32>
    %100 = arith.select %71, %98, %99 : vector<16x64xi1>, vector<16x64xf32>
    %c128_93 = arith.constant 128 : index
    %c0_94 = arith.constant 0 : index
    %101 = vector.load %arg13[%c128_93, %c0_94] : memref<144x64xf32, #tpu.memory_space<vmem>>, vector<16x64xf32>
    tpu.vector_store %arg13[%c128_93, %c0_94], %100 {strides = array<i32>} : memref<144x64xf32, #tpu.memory_space<vmem>>, vector<16x64xf32>,
    %c0_95 = arith.constant 0 : index
    %c0_96 = arith.constant 0 : index
    %102 = vector.load %arg4[%c0_95, %c0_96] : memref<8x144xf32, #tpu.memory_space<vmem>>, vector<8x144xf32>
    %c0_97 = arith.constant 0 : index
    %c0_98 = arith.constant 0 : index
    %103 = vector.load %arg13[%c0_97, %c0_98] : memref<144x64xf32, #tpu.memory_space<vmem>>, vector<144x64xf32>
    %cst_99 = arith.constant dense<0.000000e+00> : vector<8x64xf32>
    %104 = tpu.matmul %102, %103, %cst_99 {dimension_numbers = #tpu.dot_dimension_numbers<[1], [0], [0], [1], [0, 0, 1, 1], [], []>} : vector<8x144xf32>, vector<144x64xf32>, vector<8x64xf32> -> vector<8x64xf32>
    %c0_100 = arith.constant 0 : index
    %c0_101 = arith.constant 0 : index
    %105 = vector.load %arg5[%c0_100, %c0_101] : memref<8x1xf32, #tpu.memory_space<vmem>>, vector<8x1xf32>
    %106 = vector.broadcast %105 : vector<8x1xf32> to vector<8x64xf32>
    %107 = arith.addf %104, %106 : vector<8x64xf32>
    %cst_102 = arith.constant 0.000000e+00 : f32
    %108 = vector.broadcast %cst_102 : f32 to vector<8x64xf32>
    %109 = arith.maximumf %107, %108 : vector<8x64xf32>
    %cst_103 = arith.constant 0.000000e+00 : f32
    %110 = vector.broadcast %cst_103 : f32 to vector<8x192xf32>
    %c0_104 = arith.constant 0 : index
    %c0_105 = arith.constant 0 : index
    %111 = vector.load %arg14[%c0_104, %c0_105] : memref<8x192xf32, #tpu.memory_space<vmem>>, vector<8x192xf32>
    tpu.vector_store %arg14[%c0_104, %c0_105], %110 {strides = array<i32>} : memref<8x192xf32, #tpu.memory_space<vmem>>, vector<8x192xf32>,
    %c0_106 = arith.constant 0 : index
    %c0_107 = arith.constant 0 : index
    %112 = vector.load %arg14[%c0_106, %c0_107] : memref<8x192xf32, #tpu.memory_space<vmem>>, vector<8x64xf32>
    tpu.vector_store %arg14[%c0_106, %c0_107], %109 {strides = array<i32>} : memref<8x192xf32, #tpu.memory_space<vmem>>, vector<8x64xf32>,
    %c0_108 = arith.constant 0 : index
    %c0_109 = arith.constant 0 : index
    %113 = vector.load %arg14[%c0_108, %c0_109] : memref<8x192xf32, #tpu.memory_space<vmem>>, vector<8x64xf32>
    %c0_110 = arith.constant 0 : index
    %c1_111 = arith.constant 1 : index
    %114 = vector.load %arg14[%c0_110, %c1_111] : memref<8x192xf32, #tpu.memory_space<vmem>>, vector<8x64xf32>
    %115 = arith.maximumf %113, %114 : vector<8x64xf32>
    %c0_112 = arith.constant 0 : index
    %c8_113 = arith.constant 8 : index
    %116 = vector.load %arg14[%c0_112, %c8_113] : memref<8x192xf32, #tpu.memory_space<vmem>>, vector<8x64xf32>
    %c0_114 = arith.constant 0 : index
    %c9 = arith.constant 9 : index
    %117 = vector.load %arg14[%c0_114, %c9] : memref<8x192xf32, #tpu.memory_space<vmem>>, vector<8x64xf32>
    %118 = arith.maximumf %116, %117 : vector<8x64xf32>
    %119 = arith.maximumf %115, %118 : vector<8x64xf32>
    %c0_115 = arith.constant 0 : index
    %c0_116 = arith.constant 0 : index
    %120 = vector.load %arg7[%c0_115, %c0_116] : memref<64x16xf32, #tpu.memory_space<vmem>>, vector<64x16xf32>
    %cst_117 = arith.constant dense<0.000000e+00> : vector<8x16xf32>
    %121 = tpu.matmul %119, %120, %cst_117 {dimension_numbers = #tpu.dot_dimension_numbers<[1], [0], [0], [1], [0, 0, 1, 1], [], []>} : vector<8x64xf32>, vector<64x16xf32>, vector<8x16xf32> -> vector<8x16xf32>
    %c0_118 = arith.constant 0 : index
    %c0_119 = arith.constant 0 : index
    %c0_120 = arith.constant 0 : index
    %122 = vector.load %arg8[%c0_118, %c0_119, %c0_120] : memref<1x8x16xf32, #tpu.memory_space<vmem>>, vector<1x8x16xf32>
    %123 = vector.shape_cast %122 : vector<1x8x16xf32> to vector<8x16xf32>
    %124 = vector.shape_cast %121 : vector<8x16xf32> to vector<1x8x16xf32>
    tpu.vector_store %arg8[%c0_118, %c0_119, %c0_120], %124 {strides = array<i32>} : memref<1x8x16xf32, #tpu.memory_space<vmem>>, vector<1x8x16xf32>,
    return
  }
  func.func @transform_0(%arg0: i32) -> (i32, i32, i32) {
    %c0_i32 = arith.constant 0 : i32
    %c0_i32_0 = arith.constant 0 : i32
    %c0_i32_1 = arith.constant 0 : i32
    return %arg0, %c0_i32, %c0_i32_0 : i32, i32, i32
  }
  func.func @transform_1(%arg0: i32) -> (i32, i32) {
    %c0_i32 = arith.constant 0 : i32
    %c0_i32_0 = arith.constant 0 : i32
    %c0_i32_1 = arith.constant 0 : i32
    return %c0_i32, %c0_i32_0 : i32, i32
  }
  func.func @transform_2(%arg0: i32) -> (i32, i32) {
    %c0_i32 = arith.constant 0 : i32
    %c0_i32_0 = arith.constant 0 : i32
    %c0_i32_1 = arith.constant 0 : i32
    return %c0_i32, %c0_i32_0 : i32, i32
  }
  func.func @transform_3(%arg0: i32) -> (i32, i32) {
    %c0_i32 = arith.constant 0 : i32
    %c0_i32_0 = arith.constant 0 : i32
    %c0_i32_1 = arith.constant 0 : i32
    return %c0_i32, %c0_i32_0 : i32, i32
  }
  func.func @transform_4(%arg0: i32) -> (i32, i32) {
    %c0_i32 = arith.constant 0 : i32
    %c0_i32_0 = arith.constant 0 : i32
    %c0_i32_1 = arith.constant 0 : i32
    return %c0_i32, %c0_i32_0 : i32, i32
  }
  func.func @transform_5(%arg0: i32) -> (i32, i32) {
    %c0_i32 = arith.constant 0 : i32
    %c0_i32_0 = arith.constant 0 : i32
    %c0_i32_1 = arith.constant 0 : i32
    return %c0_i32, %c0_i32_0 : i32, i32
  }
  func.func @transform_6(%arg0: i32) -> (i32, i32) {
    %c0_i32 = arith.constant 0 : i32
    %c0_i32_0 = arith.constant 0 : i32
    %c0_i32_1 = arith.constant 0 : i32
    return %c0_i32, %c0_i32_0 : i32, i32
  }
  func.func @transform_7(%arg0: i32) -> (i32, i32, i32) {
    %c0_i32 = arith.constant 0 : i32
    %c0_i32_0 = arith.constant 0 : i32
    %c0_i32_1 = arith.constant 0 : i32
    return %arg0, %c0_i32, %c0_i32_0 : i32, i32, i32
  }
}

</mosaic_0001>

<bundles_post_ra>
// kernel: backbone_forward.1
= control target key start
LH: loop header
LB: loop body
LE: loop exit
PB: predicated region body
PF: predicated region fallthrough
CT: control target
= control target key end

     0   :  { %12 = vsyncpa [#allocation9], 0  ;;  %s1622_s24 = smov 0   ;;  %s1984_s0 = inlined_call_operand.vmem [shape: f32[2,3,256], index: 0, kind: input, shape index: {}]   ;;  %s1985_s1 = inlined_call_operand.vmem [shape: f32[16,72], index: 1, kind: input, shape index: {}]   ;;  %s1986_s2 = inlined_call_operand.vmem [shape: f32[16,1], index: 2, kind: input, shape index: {}]   ;;  %s1987_s3 = inlined_call_operand.vmem [shape: f32[8,144], index: 3, kind: input, shape index: {}]   ;;  %s1988_s4 = inlined_call_operand.vmem [shape: f32[8,1], index: 4, kind: input, shape index: {}]   ;;  %s1989_s5 = inlined_call_operand.hbm [shape: f32[256,64], index: 5, kind: input, shape index: {}]   ;;  %s1990_s6 = inlined_call_operand.vmem [shape: f32[64,16], index: 6, kind: input, shape index: {}]   ;;  %s1991_s7 = inlined_call_operand.vmem [shape: f32[2,8,16], index: 7, kind: output, shape index: {}]  }
   0x1 LB: > { %s1628_s25 = sadd.s32 4294967295, %s1558_s24   ;;  %p1224_p0 = scmp.ge.s32.totalorder %s1558_s24, 1  ;;  %s1558_s24 = sphi %s1622_s24, %s18_s24  }
   0x2   : > { %p201_p1 = scmp.lt.s32.totalorder %s1558_s24, 3  ;;  %s1560_s26 = smov [#allocation8]  }
   0x3   : > { %s225_s27 = sshll.u32 %s1560_s26, 4  ;;  %p1992_p3 = scmp.eq.s32.totalorder %s1628_s25, 0  ;;  %s226_s27 = int_to_ptr.vmem [resolvable:$true] %s225_s27 }
   0x4   : > { %p1632_p2 = pnand %p1224_p0, %p201_p1  ;;  %s1520_s9 = scalar_lea.hbm %s1989_s5, 4096 }
   0x5   : > { %p1521_p6 = scmp.ne.s32.totalorder %s1989_s5, %s1520_s9  ;;  %p1527_p10 = scmp.lt.u32.totalorder %s1520_s9, %s1989_s5 }
   0x6   : > { %s1994_s28 = scalar_select %p1632_p2, 1, 0 }
   0x7   : > { %p1416_p4 = pneg %p1632_p2 }
   0x9   : > { %p1641_p5 = pnand %p1992_p3, %p1416_p4 }
   0xb   : > { %p1522_p7 = pneg %p1641_p5 }
   0xd   : > { %p1523_p8 = pnand %p1522_p7, %p1521_p6 }
   0xf   : > { %p1524_p9 = pneg %p1523_p8 }
  0x11   : > { %p1529_p11 = pnand %p1527_p10, %p1524_p9 }
  0x13   : > { %1532 = shalt.err (!%p1529_p11)
}
  0x14   : > { %s1533_s14 = scalar_lea.vmem %s226_s27, 4096  ;;  %p1541_p1 = scmp.lt.s32.totalorder %s226_s27, %s226_s27 }
  0x15   : > { %p1534_p12 = scmp.ne.s32.totalorder %s226_s27, %s1533_s14  ;;  %p1542_p4 = scmp.lt.s32.totalorder %s1533_s14, %s1533_s14 }
  0x17   : > { %p1536_p13 = pnand %p1534_p12, %p1522_p7  ;;  %p1543_p3 = por %p1542_p4, %p1541_p1 }
  0x19   : > { %p1537_p0 = pneg %p1536_p13 }
  0x1b   : > { %p1544_p2 = pnand %p1543_p3, %p1537_p0 }
  0x1d   : > { %1547 = shalt.err (!%p1544_p2)
}
  0x1e   : > { %s1561_s15 = smov 128   ;;  %s1562_s16 = smov 8  }
  0x1f   : > { %1419 = dma.hbm_to_vmem [thread:$0]  (!%p1641_p5), %s1989_s5, 4096, %s226_s27, [#allocation9], %s1561_s15, %s1561_s15, %s1562_s16  }
  0x20   : > { %p1996_p6 = scmp.ne.s32.totalorder %s1994_s28, 0 }
  0x21   : > { %p1997_p8 = scmp.eq.s32.totalorder (!%p1996_p6), %s1628_s25, 0 }
  0x22   : > { %252 = sbr.rel (%p1996_p6) target bundleno = 1743 (0x6cf), region = 48 }
  0x29   : > { %1553 = dma.done.wait (%p1997_p8), [#allocation9], 4096   ;;  %p1998_p7 = pmov %p1997_p8 }
  0x2a   : > { %vm796_vm0 = vcmask 523264   ;;  %v1563_v0 = vmov 0.0   ;;  %s1564_s19 = smov 17   ;;  %s1565_s20 = smov 15   ;;  %v499_v7 = vld [vmem:[%s1986_s2] sm:$0xff]  ;;  %v1572_v8 = vmov 0   ;;  %v302_v12 = vlaneseq }
  0x2b   : > { %1555 = vsyncadd (%p1998_p7), [#allocation9], 4294963200  ;;  %317 = vrot.lane.b32.xlu1 %v1563_v0, %s1564_s19  ;;  %294 = vst [vmem:[#allocation2 + $0x8] sm:$0xff] %v1563_v0  ;;  %357 = vrot.lane.b32.xlu0 %v1563_v0, %s1565_s20  ;;  %p283_p2 = scmp.lt.s32.totalorder %s1628_s25, 1  ;;  %s1566_s21 = smov 16   ;;  %v500_v9 = vld [vmem:[%s1986_s2 + $0x8] sm:$0xff] }
  0x2c   : > { %295 = vst [vmem:[#allocation2 + $0x10] sm:$0xff] %v1563_v0  ;;  %795 = vst [vmem:[#allocation5 + $0x8] sm:$0xff] %v1563_v0  ;;  %582 = vmatprep.mubr.f32.mxu0 %v1563_v0  ;;  %s1567_s28 = smov 1   ;;  %s1568_s29 = smov 127   ;;  %1487 = vset.pattern.permute.xlu1 %v1572_v8  ;;  %v1713_v13 = vand.u32 127, %v302_v12  ;;  %vm323_vm2 = vcmask 138240  }
  0x2d   : > { %799 = vst [vmem:[#allocation5 + $0x20] sm:$0xff] %v1563_v0  ;;  %1061 = vst [vmem:[#allocation7] sm:$0xff] %v1563_v0  ;;  %s2016_s25 = smov (!%p283_p2, %s1628_s25), 1  ;;  %s1569_s30 = smov 112   ;;  %1488 = vset.pattern.permute.xlu0 %v1572_v8  ;;  %vm344_vm3 = vcmask 130048   ;;  %vm384_vm5 = vcmask 7168  }
  0x2e   : > { %s1238_s22 = sshll.u32 %s2016_s25, 3  ;;  %s1570_s8 = smov 113   ;;  %v304_v16 = vadd.s32 128, %v1713_v13  ;;  %v305_v20 = vand.u32 15, %v1713_v13  ;;  %vm1573_vm6 = vmmov 1   ;;  %vm363_vm8 = vcmask 121856  }
  0x2f   : > { %338 = vrot.lane.b32.xlu1 %v1563_v0, %s1566_s21  ;;  %s287_s27 = scalar_lea.vmem %s1984_s0, %s1238_s22  ;;  %s1571_s9 = smov 111   ;;  %vm409_vm13 = vcmask 1039360   ;;  %vm451_vm15 = vcmask 916480   ;;  %v479_v12 = vld [vmem:[%s1985_s1] sm:$0xff]  ;;  %v704_v29 = vld [vmem:[#allocation8 + $0x88] sm:$0xff] }
  0x30   : > { %v292_v1 = vld [vmem:[%s287_s27] sm:$0x77]  ;;  %v306_v19 = vand.u32 15, %v304_v16  ;;  %vm1721_vm4 = vcmp.ne.s32.totalorder %v305_v20, 0  ;;  %vm1746_vm11 = vcmp.ne.s32.totalorder %v305_v20, 15  ;;  %v688_v33 = vld [vmem:[#allocation8 + $0x8] sm:$0xff] }
  0x31   : > { %v298_v2 = vcombine.high %v292_v1, %v292_v1  ;;  %300 = vst [vmem:[#allocation2 + $0x8] sm:$0x7] %v292_v1  ;;  %vm1741_vm10 = vmpackc.low %vm1573_vm6, %vm1721_vm4  ;;  %v689_v40 = vld [vmem:[#allocation8 + $0x10] sm:$0xff]  ;;  %v708_v44 = vld [vmem:[#allocation8 + $0xa8] sm:$0xff]  ;;  %s1574_s18 = smov 9   ;;  %s1578_s23 = smov 120  }
  0x32   : > { %vm1717_vm1 = vcmp.ne.s32.totalorder %v306_v19, 0  ;;  %vm1734_vm9 = vcmp.ne.s32.totalorder %v306_v19, 15  ;;  %vm1327_vm14 = vmpackc.low %vm1721_vm4, %vm1746_vm11  ;;  %vm430_vm4 = vcmask 924672   ;;  %s1579_s26 = smov 119  }
  0x33   : > { %378 = vrot.lane.b32.xlu1 %v1563_v0, %s1567_s28  ;;  %301 = vst [vmem:[#allocation2 + $0x10] sm:$0x7] %v298_v2  ;;  %vm1729_vm7 = vmpackc.low %vm1573_vm6, %vm1717_vm1 }
  0x34   : > { %vm1324_vm12 = vmpackc.low %vm1717_vm1, %vm1734_vm9 }
  0x35   : > { %vm1330_vm1 = vmpackc.low %vm1734_vm9, %vm1573_vm6 }
  0x38   : > { %v1688_v3 = vld [vmem:[#allocation2 + $0x8] sm:$0xff] }
  0x3a   : > { %v1690_v4 = vld [vmem:[#allocation2 + $0x10] sm:$0xff] }
  0x3b   : > { %v1452_v5 = vpack.i.bf16 %v1690_v4, %v1688_v3  ;;  %v1472_v6 = vpack.i.bf16 %v1563_v0, %v1690_v4 }
  0x3d   : > { %1453 = vrot.lane.b32.xlu0 %v1452_v5, %s1564_s19  ;;  %1468 = vrot.lane.b32.xlu1 %v1452_v5, %s1567_s28  ;;  %s1575_s19 = smov 8  }
  0x41   : > { %1458 = vrot.lane.b32.xlu0 %v1452_v5, %s1566_s21  ;;  %403 = vrot.lane.b32.xlu1 %v1688_v3, %s1568_s29  ;;  %s1577_s21 = smov 121  }
  0x45   : > { %1463 = vrot.lane.b32.xlu0 %v1452_v5, %s1565_s20  ;;  %1483 = vrot.lane.b32.xlu1 %v1472_v6, %s1569_s30  ;;  %s1576_s20 = smov 7  }
  0x49   : > { %1473 = vrot.lane.b32.xlu0 %v1472_v6, %s1568_s29  ;;  %445 = vrot.lane.b32.xlu1 %v1688_v3, %s1569_s30 }
  0x4d   : > { %1478 = vrot.lane.b32.xlu0 %v1472_v6, %s1570_s8  ;;  %468 = vrot.lane.b32.xlu1 %v1563_v0, %s1571_s9 }
  0x51   : > { %424 = vrot.lane.b32.xlu0 %v1688_v3, %s1570_s8  ;;  %503 = vperm.xlu1 %1487, %v499_v7  }
  0x55   : > { %466 = vrot.lane.b32.xlu0 %v1690_v4, %s1571_s9 }
  0x59   : > { %464 = vrot.lane.b32.xlu0 %v1688_v3, %s1571_s9 }
  0x5d   : > { %508 = vperm.xlu0 %1488, %v500_v9  }
  0x9d   : > { %v318_v10 = vpop.permute.xlu1 %317  ;;  %v358_v14 = vpop.permute.xlu0 %357 }
  0xa1   : > { %v339_v11 = vpop.permute.xlu1 %338 }
  0xa5   : > { %v379_v15 = vpop.permute.xlu1 %378 }
  0xaf   : > { %v1454_v17 = vpop.permute.xlu0 %1453  ;;  %v1469_v18 = vpop.permute.xlu1 %1468 }
  0xb0   : > { %v1456_v21 = vunpack.i.h.bf16 %v1454_v17  ;;  %v1455_v22 = vunpack.i.l.bf16 %v1454_v17  ;;  %v1471_v26 = vunpack.i.h.bf16 %v1469_v18  ;;  %v1470_v30 = vunpack.i.l.bf16 %v1469_v18 }
  0xb2   : > { %v325_v31 = vsel %vm323_vm2, %v1455_v22, %v1456_v21  ;;  %v324_v34 = vsel %vm323_vm2, %v318_v10, %v1455_v22  ;;  %v386_v41 = vsel %vm384_vm5, %v1470_v30, %v1471_v26  ;;  %v385_v46 = vsel %vm384_vm5, %v379_v15, %v1470_v30  ;;  %vm1333_vm2 = vmpackc.low %vm1746_vm11, %vm1573_vm6  ;;  %v480_v15 = vld [vmem:[%s1985_s1 + $0x8] sm:$0xff]  ;;  %v687_v30 = vld [vmem:[#allocation8] sm:$0xff] }
  0xb3   : > { %v1459_v23 = vpop.permute.xlu0 %1458  ;;  %v404_v25 = vpop.permute.xlu1 %403  ;;  %vm470_vm6 = vcmask 908288  }
  0xb4   : > { %v1461_v27 = vunpack.i.h.bf16 %v1459_v23  ;;  %v1460_v28 = vunpack.i.l.bf16 %v1459_v23 }
  0xb6   : > { %v346_v32 = vsel %vm344_vm3, %v1460_v28, %v1461_v27  ;;  %v345_v35 = vsel %vm344_vm3, %v339_v11, %v1460_v28  ;;  %v703_v28 = vld [vmem:[#allocation8 + $0x80] sm:$0xff] }
  0xb7   : > { %v1464_v36 = vpop.permute.xlu0 %1463  ;;  %v1317_v38 = vpack.c.bf16 %v346_v32, %v325_v31  ;;  %v1320_v39 = vpack.c.bf16 %v345_v35, %v324_v34  ;;  %v1484_v45 = vpop.permute.xlu1 %1483  ;;  %v1341_v32 = vpack.c.bf16 %v704_v29, %v703_v28  ;;  %v705_v34 = vld [vmem:[#allocation8 + $0x90] sm:$0xff]  ;;  %v706_v35 = vld [vmem:[#allocation8 + $0x98] sm:$0xff] }
  0xb8   : > { %v1466_v42 = vunpack.i.h.bf16 %v1464_v36  ;;  %v1465_v43 = vunpack.i.l.bf16 %v1464_v36  ;;  %v1486_v54 = vunpack.i.h.bf16 %v1484_v45  ;;  %v1485_v55 = vunpack.i.l.bf16 %v1484_v45 }
  0xb9   : > { %1319 = vmatprep.subr.msk.bf16.mxu0 %vm1729_vm7, %v1317_v38  ;;  %v1343_v38 = vpack.c.bf16 %v688_v33, %v687_v30  ;;  %1342 = vmatprep.subr.bf16.mxu1 %v1341_v32 }
  0xba   : > { %v364_v47 = vsel %vm363_vm8, %v358_v14, %v1465_v43  ;;  %v365_v48 = vsel %vm363_vm8, %v1465_v43, %v1466_v42  ;;  %1322 = vmatpush1.bf16.msk.msra.mxu0 %vm1741_vm10, %v1320_v39  ;;  %v453_v62 = vsel %vm451_vm15, %v1485_v55, %v1486_v54  ;;  %vm511_vm8 = vcmask 588800   ;;  %v707_v42 = vld [vmem:[#allocation8 + $0xa0] sm:$0xff]  ;;  %v693_v54 = vld [vmem:[#allocation8 + $0x30] sm:$0xff] }
  0xbb   : > { %v1323_v49 = vpack.c.bf16 %v386_v41, %v365_v48  ;;  %v1326_v50 = vpack.c.bf16 %v385_v46, %v364_v47  ;;  %v1474_v51 = vpop.permute.xlu0 %1473  ;;  %v446_v61 = vpop.permute.xlu1 %445  ;;  %v1345_v39 = vpack.c.bf16 %v706_v35, %v705_v34  ;;  %v690_v41 = vld [vmem:[#allocation8 + $0x18] sm:$0xff]  ;;  %1344 = vmatpush3.bf16.msra.mxu1 %v1343_v38  ;;  %v1349_v47 = vpack.c.bf16 %v708_v44, %v707_v42  ;;  %v691_v48 = vld [vmem:[#allocation8 + $0x20] sm:$0xff] }
  0xbc   : > { %v1476_v52 = vunpack.i.h.bf16 %v1474_v51  ;;  %v1475_v53 = vunpack.i.l.bf16 %v1474_v51  ;;  %v452_v2 = vsel %vm451_vm15, %v446_v61, %v1485_v55  ;;  %v1347_v46 = vpack.c.bf16 %v690_v41, %v689_v40  ;;  %v710_v51 = vld [vmem:[#allocation8 + $0xb8] sm:$0xff]  ;;  %v696_v61 = vld [vmem:[#allocation8 + $0x48] sm:$0xff] }
  0xbd   : > { %1325 = vmatprep.subr.msk.bf16.mxu0 %vm1324_vm12, %v1323_v49  ;;  %1346 = vmatprep.subr.bf16.mxu1 %v1345_v39  ;;  %v692_v49 = vld [vmem:[#allocation8 + $0x28] sm:$0xff]  ;;  %v694_v55 = vld [vmem:[#allocation8 + $0x38] sm:$0xff]  ;;  %vm870_vm12 = vcmask 56320  }
  0xbe   : > { %v410_v56 = vsel %vm409_vm13, %v404_v25, %v1475_v53  ;;  %v411_v57 = vsel %vm409_vm13, %v1475_v53, %v1476_v52  ;;  %1328 = vmatpush1.bf16.msk.msra.mxu0 %vm1327_vm14, %v1326_v50  ;;  %v709_v50 = vld [vmem:[#allocation8 + $0xb0] sm:$0xff]  ;;  %v1351_v52 = vpack.c.bf16 %v692_v49, %v691_v48 }
  0xbf   : > { %v1329_v58 = vpack.c.bf16 %v411_v57, %v1690_v4  ;;  %v1332_v59 = vpack.c.bf16 %v410_v56, %v1688_v3  ;;  %v1479_v60 = vpop.permute.xlu0 %1478  ;;  %v469_v8 = vpop.permute.xlu1 %468  ;;  %1348 = vmatpush3.bf16.msra.mxu1 %v1347_v46  ;;  %v1353_v53 = vpack.c.bf16 %v710_v51, %v709_v50  ;;  %v711_v56 = vld [vmem:[#allocation8 + $0xc0] sm:$0xff]  ;;  %v712_v57 = vld [vmem:[#allocation8 + $0xc8] sm:$0xff] }
  0xc0   : > { %v1481_v63 = vunpack.i.h.bf16 %v1479_v60  ;;  %v1480_v1 = vunpack.i.l.bf16 %v1479_v60  ;;  %1350 = vmatprep.subr.bf16.mxu1 %v1349_v47  ;;  %v695_v60 = vld [vmem:[#allocation8 + $0x40] sm:$0xff] }
  0xc1   : > { %1331 = vmatprep.subr.msk.bf16.mxu0 %vm1330_vm1, %v1329_v58  ;;  %v1355_v58 = vpack.c.bf16 %v694_v55, %v693_v54 }
  0xc2   : > { %1334 = vmatpush1.bf16.msk.msra.mxu0 %vm1333_vm2, %v1332_v59  ;;  %v432_v5 = vsel %vm430_vm4, %v1480_v1, %v1481_v63  ;;  %v1357_v59 = vpack.c.bf16 %v712_v57, %v711_v56  ;;  %v714_v63 = vld [vmem:[#allocation8 + $0xd8] sm:$0xff] }
  0xc3   : > { %v425_v6 = vpop.permute.xlu0 %424  ;;  %v1335_v4 = vpack.c.bf16 %v453_v62, %v432_v5  ;;  %1352 = vmatpush3.bf16.msra.mxu1 %v1351_v52  ;;  %v713_v62 = vld [vmem:[#allocation8 + $0xd0] sm:$0xff] }
  0xc4   : > { %v431_v7 = vsel %vm430_vm4, %v425_v6, %v1480_v1  ;;  %1354 = vmatprep.subr.bf16.mxu1 %v1353_v53  ;;  %v1359_v1 = vpack.c.bf16 %v696_v61, %v695_v60  ;;  %v697_v5 = vld [vmem:[#allocation8 + $0x50] sm:$0xff]  ;;  %v698_v6 = vld [vmem:[#allocation8 + $0x58] sm:$0xff] }
  0xc5   : > { %v1338_v3 = vpack.c.bf16 %v452_v2, %v431_v7  ;;  %1337 = vmatprep.subr.msk.bf16.mxu0 %vm1729_vm7, %v1335_v4  ;;  %v1361_v2 = vpack.c.bf16 %v714_v63, %v713_v62  ;;  %v1363_v4 = vpack.c.bf16 %v698_v6, %v697_v5  ;;  %v715_v7 = vld [vmem:[#allocation8 + $0xe0] sm:$0xff]  ;;  %v981_v5 = vld [vmem:[%s1988_s4] sm:$0xff]  ;;  %v1580_v6 = vmov 0.0|0.0  }
  0xc7   : > { %v467_v9 = vpop.permute.xlu0 %466  ;;  %1340 = vmatpush1.bf16.msk.msra.mxu0 %vm1741_vm10, %v1338_v3  ;;  %1356 = vmatpush3.bf16.msra.mxu1 %v1355_v58  ;;  %v716_v3 = vld [vmem:[#allocation8 + $0xe8] sm:$0xff] }
  0xc8   : > { %v472_v10 = vsel %vm470_vm6, %v467_v9, %v469_v8  ;;  %1358 = vmatprep.subr.bf16.mxu1 %v1357_v59  ;;  %v1365_v8 = vpack.c.bf16 %v716_v3, %v715_v7 }
  0xc9   : > { %1249 = vmatprep.subr.msk.mxu0 %vm1734_vm9, %v472_v10  ;;  %v700_v10 = vld [vmem:[#allocation8 + $0x68] sm:$0xff]  ;;  %vm822_vm9 = vcmask 72704  }
  0xcb   : > { %v465_v11 = vpop.permute.xlu0 %464  ;;  %1360 = vmatpush3.bf16.msra.mxu1 %v1359_v1 }
  0xcc   : > { %v471_v14 = vsel %vm470_vm6, %v465_v11, %v467_v9  ;;  %1362 = vmatprep.subr.bf16.mxu1 %v1361_v2  ;;  %v699_v9 = vld [vmem:[#allocation8 + $0x60] sm:$0xff] }
  0xcd   : > { %1250 = vmatpush1.msk.msra.mxu0 %vm1746_vm11, %v471_v14  ;;  %v1367_v11 = vpack.c.bf16 %v700_v10, %v699_v9  ;;  %v718_v14 = vld [vmem:[#allocation8 + $0xf8] sm:$0xff]  ;;  %vm847_vm11 = vcmask 64512  }
  0xce   : > { %1232 = vmatmul.mubr.msk.f32.vlgmr.msra.gmra.mrb[0].mxu0 %vm511_vm8, %v479_v12  ;;  %v717_v12 = vld [vmem:[#allocation8 + $0xf0] sm:$0xff]  ;;  %1373 = vmatprep.subr.bf16.mxu0 %v1580_v6 }
  0xcf   : > { %588 = vmatprep.mubr.f32.mxu0 %v1563_v0  ;;  %1364 = vmatpush3.bf16.msra.mxu1 %v1363_v4  ;;  %v962_v4 = vld [vmem:[%s1987_s3 + $0x8] sm:$0xff] }
  0xd0   : > { %v504_v16 = vpop.permute.xlu1 %503  ;;  %1366 = vmatprep.subr.bf16.mxu1 %v1365_v8 }
  0xd2   : > { %1233 = vmatmul.mubr.msk.f32.gmra.mrb[2].mxu0 %vm511_vm8, %v480_v15  ;;  %v1369_v15 = vpack.c.bf16 %v718_v14, %v717_v12 }
  0xd3   : > { %1368 = vmatpush3.bf16.msra.mxu1 %v1367_v11  ;;  %1234 = vmatprep.mubr.msk.f32.mxu0 %vm344_vm3, %v962_v4 }
  0xd4   : > { %1370 = vmatprep.subr.bf16.mxu1 %v1369_v15  ;;  %v803_v15 = vand.u32 7, %v1713_v13 }
  0xd6   : > { %vm1876_vm7 = vcmp.ne.s32.totalorder %v803_v15, 7  ;;  %vm1880_vm10 = vcmp.ne.s32.totalorder %v803_v15, 0 }
  0xdc   : > { %v509_v20 = vpop.permute.xlu0 %508 }
 0x1a1   : > { %v584_v17 = vpop.f32.mrb[0].mxu0 }
 0x1a2   : > { %v586_v18 = vpop.f32.mrb[1].mxu0  ;;  %v1792_v21 = vadd.f32 %v584_v17, %v504_v16  ;;  %v702_v17 = vld [vmem:[#allocation8 + $0x78] sm:$0xff] }
 0x1a3   : > { %v1790_v19 = vadd.f32 %v586_v18, %v504_v16  ;;  %v701_v16 = vld [vmem:[#allocation8 + $0x70] sm:$0xff] }
 0x1a4   : > { %v595_v36 = vmax.f32 %v1792_v21, 0.0  ;;  %v1371_v18 = vpack.c.bf16 %v702_v17, %v701_v16 }
 0x1a5   : > { %v596_v22 = vmax.f32 %v1790_v19, 0.0  ;;  %v590_v23 = vpop.f32.mrb[2].mxu0 }
 0x1a6   : > { %v1795_v24 = vadd.f32 %v590_v23, %v509_v20  ;;  %v592_v25 = vpop.f32.mrb[3].mxu0  ;;  %1372 = vmatpush3.bf16.msra.mxu1 %v1371_v18 }
 0x1a7   : > { %v1489_v26 = vpack.i.bf16 %v1563_v0, %v596_v22  ;;  %v1800_v27 = vadd.f32 %v592_v25, %v509_v20  ;;  %1400 = vmatprep.subr.bf16.mxu1 %v1580_v6 }
 0x1a8   : > { %v597_v31 = vmax.f32 %v1795_v24, 0.0 }
 0x1a9   : > { %v598_v37 = vmax.f32 %v1800_v27, 0.0  ;;  %1490 = vrot.lane.b32.xlu1 %v1489_v26, %s1568_s29 }
 0x1aa   : > { %v1499_v43 = vpack.i.bf16 %v597_v31, %v1563_v0 }
 0x1ab   : > { %v1494_v45 = vpack.i.bf16 %v598_v37, %v595_v36 }
 0x1ac   : > { %1500 = vrot.lane.b32.xlu0 %v1499_v43, %s1568_s29 }
 0x1ad   : > { %1495 = vrot.lane.b32.xlu1 %v1494_v45, %s1568_s29 }
 0x21b   : > { %v1491_v20 = vpop.permute.xlu1 %1490 }
 0x21c   : > { %v1493_v23 = vunpack.i.h.bf16 %v1491_v20  ;;  %v1492_v25 = vunpack.i.l.bf16 %v1491_v20 }
 0x21e   : > { %v653_v26 = vmax.f32 %v1493_v23, 0.0  ;;  %v638_v28 = vsel %vm409_vm13, %v1492_v25, %v1493_v23  ;;  %v1501_v29 = vpop.permute.xlu0 %1500 }
 0x21f   : > { %v1503_v30 = vunpack.i.h.bf16 %v1501_v29  ;;  %v1502_v32 = vunpack.i.l.bf16 %v1501_v29  ;;  %v1496_v33 = vpop.permute.xlu1 %1495  ;;  %v646_v34 = vmax.f32 %v596_v22, %v638_v28 }
 0x220   : > { %v1498_v35 = vunpack.i.h.bf16 %v1496_v33  ;;  %v1497_v38 = vunpack.i.l.bf16 %v1496_v33 }
 0x221   : > { %v1504_v39 = vpack.i.bf16 %v653_v26, %v646_v34  ;;  %v656_v43 = vmax.f32 %v1502_v32, 0.0 }
 0x222   : > { %v639_v40 = vsel %vm409_vm13, %v1503_v30, %v1498_v35  ;;  %v640_v41 = vsel %vm409_vm13, %v1498_v35, %v1502_v32  ;;  %v637_v42 = vsel %vm409_vm13, %v1497_v38, %v1492_v25 }
 0x223   : > { %1505 = vrot.lane.b32.xlu1 %v1504_v39, %s1569_s30  ;;  %v647_v44 = vmax.f32 %v597_v31, %v639_v40  ;;  %v645_v45 = vmax.f32 %v595_v36, %v637_v42  ;;  %v648_v19 = vmax.f32 %v598_v37, %v640_v41 }
 0x225   : > { %v1514_v22 = vpack.i.bf16 %v647_v44, %v656_v43  ;;  %v1509_v46 = vpack.i.bf16 %v648_v19, %v645_v45 }
 0x227   : > { %1515 = vrot.lane.b32.xlu1 %v1514_v22, %s1569_s30  ;;  %1510 = vrot.lane.b32.xlu0 %v1509_v46, %s1569_s30 }
 0x22b   : > { %814 = vrot.lane.b32.xlu0 %v1563_v0, %s1574_s18 }
 0x22f   : > { %818 = vrot.lane.b32.xlu0 %v1563_v0, %s1574_s18 }
 0x233   : > { %839 = vrot.lane.b32.xlu0 %v1563_v0, %s1575_s19 }
 0x237   : > { %843 = vrot.lane.b32.xlu0 %v1563_v0, %s1575_s19 }
 0x23b   : > { %862 = vrot.lane.b32.xlu0 %v1563_v0, %s1576_s20 }
 0x23f   : > { %866 = vrot.lane.b32.xlu0 %v1563_v0, %s1576_s20 }
 0x243   : > { %887 = vrot.lane.b32.xlu0 %v1563_v0, %s1567_s28 }
 0x247   : > { %891 = vrot.lane.b32.xlu0 %v1563_v0, %s1567_s28 }
 0x295   : > { %v1506_v21 = vpop.permute.xlu1 %1505 }
 0x296   : > { %v1508_v24 = vunpack.i.h.bf16 %v1506_v21  ;;  %v1507_v27 = vunpack.i.l.bf16 %v1506_v21 }
 0x298   : > { %v676_v31 = vsel %vm451_vm15, %v1507_v27, %v1508_v24 }
 0x299   : > { %v1516_v36 = vpop.permute.xlu1 %1515  ;;  %v1511_v37 = vpop.permute.xlu0 %1510  ;;  %v684_v47 = vmax.f32 %v646_v34, %v676_v31 }
 0x29a   : > { %v1518_v48 = vunpack.i.h.bf16 %v1516_v36  ;;  %v1517_v49 = vunpack.i.l.bf16 %v1516_v36  ;;  %v1513_v50 = vunpack.i.h.bf16 %v1511_v37  ;;  %v1512_v51 = vunpack.i.l.bf16 %v1511_v37 }
 0x29b   : > { %783 = vmatprep.mubr.f32.mxu1 %v684_v47 }
 0x29c   : > { %v675_v52 = vsel %vm451_vm15, %v1512_v51, %v1507_v27  ;;  %v678_v53 = vsel %vm451_vm15, %v1513_v50, %v1517_v49  ;;  %v677_v56 = vsel %vm451_vm15, %v1518_v48, %v1513_v50 }
 0x29d   : > { %v683_v54 = vmax.f32 %v645_v45, %v675_v52  ;;  %v686_v55 = vmax.f32 %v648_v19, %v678_v53  ;;  %v685_v57 = vmax.f32 %v647_v44, %v677_v56  ;;  %v815_v7 = vpop.permute.xlu0 %814 }
 0x29f   : > { %784 = vmatmul.mubr.f32.vlgmr.msra.gmra.mrb[0].mxu1 %v683_v54 }
 0x2a0   : > { %788 = vmatprep.mubr.f32.mxu1 %v686_v55 }
 0x2a1   : > { %v819_v3 = vpop.permute.xlu0 %818 }
 0x2a3   : > { %789 = vmatmul.mubr.f32.gmra.mrb[2].mxu1 %v685_v57 }
 0x2a5   : > { %v840_v8 = vpop.permute.xlu0 %839 }
 0x2a9   : > { %v844_v9 = vpop.permute.xlu0 %843 }
 0x2ad   : > { %v863_v10 = vpop.permute.xlu0 %862 }
 0x2b1   : > { %v867_v11 = vpop.permute.xlu0 %866 }
 0x2b5   : > { %v888_v12 = vpop.permute.xlu0 %887 }
 0x2b9   : > { %v892_v14 = vpop.permute.xlu0 %891 }
 0x372   : > { %v1283_v58 = vpop.f32.mrb[0].mxu1 }
 0x373   : > { %v1284_v59 = vpop.f32.mrb[1].mxu1 }
 0x374   : > { %v1285_v60 = vadd.f32 %v1284_v59, %v1283_v58 }
 0x376   : > { %801 = vst.msk [vmem:[#allocation5 + $0x8] sm:$0xff] %vm796_vm0, %v1285_v60  ;;  %v1286_v61 = vpop.f32.mrb[2].mxu1 }
 0x377   : > { %v1287_v62 = vpop.f32.mrb[3].mxu1 }
 0x378   : > { %v1288_v63 = vadd.f32 %v1287_v62, %v1286_v61 }
 0x37a   : > { %802 = vst.msk [vmem:[#allocation5 + $0x20] sm:$0xff] %vm796_vm0, %v1288_v63 }
 0x37d   : > { %v903_v1 = vld [vmem:[#allocation5 + $0x8] sm:$0xff] }
 0x37e   : > { %905 = vst.msk [vmem:[#allocation6 + $0x40] sm:$0xff] %vm796_vm0, %v903_v1  ;;  %911 = vrot.lane.b32.xlu0 %v903_v1, %s1568_s29  ;;  %816 = vrot.lane.b32.xlu1 %v903_v1, %s1574_s18 }
 0x381   : > { %v904_v2 = vld [vmem:[#allocation5 + $0x20] sm:$0xff] }
 0x382   : > { %906 = vst.msk [vmem:[#allocation6 + $0x48] sm:$0xff] %vm796_vm0, %v904_v2  ;;  %925 = vrot.lane.b32.xlu0 %v903_v1, %s1577_s21  ;;  %841 = vrot.lane.b32.xlu1 %v903_v1, %s1575_s19 }
 0x386   : > { %939 = vrot.lane.b32.xlu0 %v903_v1, %s1578_s23  ;;  %864 = vrot.lane.b32.xlu1 %v903_v1, %s1576_s20 }
 0x389   : > { %v972_v63 = vld [vmem:[#allocation6 + $0x48] sm:$0xff] }
 0x38a   : > { %951 = vrot.lane.b32.xlu0 %v903_v1, %s1579_s26  ;;  %889 = vrot.lane.b32.xlu1 %v903_v1, %s1567_s28  ;;  %v971_v1 = vld [vmem:[#allocation6 + $0x40] sm:$0xff] }
 0x38e   : > { %984 = vperm.xlu0 %1488, %v981_v5   ;;  %820 = vrot.lane.b32.xlu1 %v904_v2, %s1574_s18 }
 0x392   : > { %845 = vrot.lane.b32.xlu1 %v904_v2, %s1575_s19 }
 0x396   : > { %868 = vrot.lane.b32.xlu1 %v904_v2, %s1576_s20 }
 0x39a   : > { %893 = vrot.lane.b32.xlu1 %v904_v2, %s1567_s28 }
 0x39e   : > { %913 = vrot.lane.b32.xlu1 %v904_v2, %s1568_s29 }
 0x3a2   : > { %927 = vrot.lane.b32.xlu1 %v904_v2, %s1577_s21 }
 0x3a6   : > { %941 = vrot.lane.b32.xlu1 %v904_v2, %s1578_s23 }
 0x3aa   : > { %953 = vrot.lane.b32.xlu1 %v904_v2, %s1579_s26  ;;  %v1386_v2 = vpack.c.bf16 %v972_v63, %v971_v1 }
 0x3f0   : > { %v912_v18 = vpop.permute.xlu0 %911  ;;  %v817_v20 = vpop.permute.xlu1 %816 }
 0x3f1   : > { %v917_v23 = vsel %vm1876_vm7, %v912_v18, 0.0  ;;  %v823_v25 = vsel %vm822_vm9, %v815_v7, %v817_v20  ;;  %v961_v20 = vld [vmem:[%s1987_s3] sm:$0xff] }
 0x3f2   : > { %919 = vst.msk [vmem:[#allocation6 + $0x50] sm:$0xff] %vm796_vm0, %v917_v23  ;;  %v827_v13 = vsel %vm1880_vm10, %v823_v25, 0.0 }
 0x3f3   : > { %829 = vst.msk [vmem:[#allocation6] sm:$0xff] %vm796_vm0, %v827_v13 }
 0x3f4   : > { %v926_v26 = vpop.permute.xlu0 %925  ;;  %v842_v28 = vpop.permute.xlu1 %841 }
 0x3f5   : > { %v931_v29 = vsel %vm1880_vm10, %v926_v26, 0.0  ;;  %v848_v30 = vsel %vm847_vm11, %v840_v8, %v842_v28  ;;  %v1075_v28 = vld [vmem:[%s1990_s6] sm:$0xff] }
 0x3f6   : > { %933 = vst.msk [vmem:[#allocation6 + $0x60] sm:$0xff] %vm796_vm0, %v931_v29  ;;  %852 = vst.msk [vmem:[#allocation6 + $0x10] sm:$0xff] %vm796_vm0, %v848_v30  ;;  %v1076_v29 = vld [vmem:[%s1990_s6 + $0x8] sm:$0xff]  ;;  %v1077_v30 = vld [vmem:[%s1990_s6 + $0x10] sm:$0xff] }
 0x3f8   : > { %v940_v32 = vpop.permute.xlu0 %939  ;;  %v865_v33 = vpop.permute.xlu1 %864 }
 0x3f9   : > { %945 = vst.msk [vmem:[#allocation6 + $0x70] sm:$0xff] %vm796_vm0, %v940_v32  ;;  %v871_v34 = vsel %vm870_vm12, %v863_v10, %v865_v33  ;;  %v1401_v33 = vpack.c.bf16 %v1076_v29, %v1075_v28 }
 0x3fa   : > { %v875_v35 = vsel %vm1876_vm7, %v871_v34, 0.0  ;;  %v963_v27 = vld [vmem:[#allocation6] sm:$0xff]  ;;  %v1078_v34 = vld [vmem:[%s1990_s6 + $0x18] sm:$0xff] }
 0x3fb   : > { %877 = vst.msk [vmem:[#allocation6 + $0x20] sm:$0xff] %vm796_vm0, %v875_v35  ;;  %1402 = vmatpush3.bf16.msra.mxu1 %v1401_v33  ;;  %v1404_v35 = vpack.c.bf16 %v1078_v34, %v1077_v30 }
 0x3fc   : > { %v952_v38 = vpop.permute.xlu0 %951  ;;  %v890_v39 = vpop.permute.xlu1 %889  ;;  %1403 = vmatprep.subr.bf16.mxu1 %v1580_v6 }
 0x3fd   : > { %v957_v40 = vsel %vm1876_vm7, %v952_v38, 0.0  ;;  %v895_v41 = vsel %vm384_vm5, %v888_v12, %v890_v39  ;;  %v965_v48 = vld [vmem:[#allocation6 + $0x10] sm:$0xff]  ;;  %v975_v10 = vld [vmem:[#allocation6 + $0x60] sm:$0xff]  ;;  %v1080_v39 = vld [vmem:[%s1990_s6 + $0x28] sm:$0xff] }
 0x3fe   : > { %959 = vst.msk [vmem:[#allocation6 + $0x80] sm:$0xff] %vm796_vm0, %v957_v40  ;;  %v899_v42 = vsel %vm1880_vm10, %v895_v41, 0.0  ;;  %v1079_v38 = vld [vmem:[%s1990_s6 + $0x20] sm:$0xff]  ;;  %v1081_v41 = vld [vmem:[%s1990_s6 + $0x30] sm:$0xff] }
 0x3ff   : > { %901 = vst.msk [vmem:[#allocation6 + $0x30] sm:$0xff] %vm796_vm0, %v899_v42  ;;  %1405 = vmatpush3.bf16.msra.mxu1 %v1404_v35  ;;  %v1407_v40 = vpack.c.bf16 %v1080_v39, %v1079_v38  ;;  %v1082_v42 = vld [vmem:[%s1990_s6 + $0x38] sm:$0xff] }
 0x400   : > { %v821_v43 = vpop.permute.xlu1 %820  ;;  %1406 = vmatprep.subr.bf16.mxu1 %v1580_v6 }
 0x401   : > { %v824_v44 = vsel %vm822_vm9, %v819_v3, %v821_v43  ;;  %v973_v3 = vld [vmem:[#allocation6 + $0x50] sm:$0xff] }
 0x402   : > { %v828_v45 = vsel %vm1880_vm10, %v824_v44, 0.0  ;;  %v967_v54 = vld [vmem:[#allocation6 + $0x20] sm:$0xff]  ;;  %v1410_v44 = vpack.c.bf16 %v1082_v42, %v1081_v41 }
 0x403   : > { %830 = vst.msk [vmem:[#allocation6 + $0x8] sm:$0xff] %vm796_vm0, %v828_v45  ;;  %1408 = vmatpush3.bf16.msra.mxu1 %v1407_v40 }
 0x404   : > { %v846_v19 = vpop.permute.xlu1 %845  ;;  %1409 = vmatprep.subr.bf16.mxu1 %v1580_v6 }
 0x405   : > { %v849_v22 = vsel %vm847_vm11, %v844_v9, %v846_v19  ;;  %v979_v17 = vld [vmem:[#allocation6 + $0x80] sm:$0xff] }
 0x406   : > { %853 = vst.msk [vmem:[#allocation6 + $0x18] sm:$0xff] %vm796_vm0, %v849_v22  ;;  %v969_v59 = vld [vmem:[#allocation6 + $0x30] sm:$0xff] }
 0x407   : > { %1411 = vmatpush3.bf16.msra.mxu1 %v1410_v44 }
 0x408   : > { %v869_v46 = vpop.permute.xlu1 %868 }
 0x409   : > { %v872_v21 = vsel %vm870_vm12, %v867_v11, %v869_v46 }
 0x40a   : > { %v876_v24 = vsel %vm1876_vm7, %v872_v21, 0.0  ;;  %v964_v31 = vld [vmem:[#allocation6 + $0x8] sm:$0xff] }
 0x40b   : > { %878 = vst.msk [vmem:[#allocation6 + $0x28] sm:$0xff] %vm796_vm0, %v876_v24  ;;  %v1374_v36 = vpack.c.bf16 %v964_v31, %v963_v27 }
 0x40c   : > { %v894_v37 = vpop.permute.xlu1 %893 }
 0x40d   : > { %v896_v47 = vsel %vm384_vm5, %v892_v14, %v894_v37  ;;  %1375 = vmatpush1.bf16.msra.mxu0 %v1374_v36  ;;  %v966_v49 = vld [vmem:[#allocation6 + $0x18] sm:$0xff]  ;;  %v977_v14 = vld [vmem:[#allocation6 + $0x70] sm:$0xff]  ;;  %v985_v23 = vpop.permute.xlu0 %984  ;;  %vm1581_vm5 = vmmov 0  }
 0x40e   : > { %v900_v50 = vsel %vm1880_vm10, %v896_v47, 0.0  ;;  %1376 = vmatprep.subr.bf16.mxu0 %v1580_v6  ;;  %v1377_v51 = vpack.c.bf16 %v966_v49, %v965_v48  ;;  %1314 = vmatprep.mubr.msk.f32.mxu1 %vm1581_vm5, %v1563_v0 }
 0x40f   : > { %902 = vst.msk [vmem:[#allocation6 + $0x38] sm:$0xff] %vm796_vm0, %v900_v50 }
 0x410   : > { %v914_v52 = vpop.permute.xlu1 %913 }
 0x411   : > { %v918_v53 = vsel %vm1876_vm7, %v914_v52, 0.0  ;;  %1378 = vmatpush1.bf16.msra.mxu0 %v1377_v51 }
 0x412   : > { %920 = vst.msk [vmem:[#allocation6 + $0x58] sm:$0xff] %vm796_vm0, %v918_v53  ;;  %1379 = vmatprep.subr.bf16.mxu0 %v1580_v6  ;;  %v968_v55 = vld [vmem:[#allocation6 + $0x28] sm:$0xff] }
 0x413   : > { %v1380_v56 = vpack.c.bf16 %v968_v55, %v967_v54 }
 0x414   : > { %v928_v57 = vpop.permute.xlu1 %927 }
 0x415   : > { %v932_v58 = vsel %vm1880_vm10, %v928_v57, 0.0  ;;  %1381 = vmatpush1.bf16.msra.mxu0 %v1380_v56 }
 0x416   : > { %934 = vst.msk [vmem:[#allocation6 + $0x68] sm:$0xff] %vm796_vm0, %v932_v58  ;;  %1382 = vmatprep.subr.bf16.mxu0 %v1580_v6  ;;  %v970_v60 = vld [vmem:[#allocation6 + $0x38] sm:$0xff] }
 0x417   : > { %v1383_v61 = vpack.c.bf16 %v970_v60, %v969_v59 }
 0x418   : > { %v942_v62 = vpop.permute.xlu1 %941 }
 0x419   : > { %946 = vst.msk [vmem:[#allocation6 + $0x78] sm:$0xff] %vm796_vm0, %v942_v62  ;;  %1384 = vmatpush1.bf16.msra.mxu0 %v1383_v61  ;;  %v974_v4 = vld [vmem:[#allocation6 + $0x58] sm:$0xff] }
 0x41a   : > { %1385 = vmatprep.subr.bf16.mxu0 %v1580_v6  ;;  %v1389_v8 = vpack.c.bf16 %v974_v4, %v973_v3 }
 0x41c   : > { %v954_v5 = vpop.permute.xlu1 %953 }
 0x41d   : > { %v958_v7 = vsel %vm1876_vm7, %v954_v5, 0.0  ;;  %1387 = vmatpush1.bf16.msra.mxu0 %v1386_v2  ;;  %v976_v9 = vld [vmem:[#allocation6 + $0x68] sm:$0xff] }
 0x41e   : > { %960 = vst.msk [vmem:[#allocation6 + $0x88] sm:$0xff] %vm796_vm0, %v958_v7  ;;  %1388 = vmatprep.subr.bf16.mxu0 %v1580_v6  ;;  %v1392_v11 = vpack.c.bf16 %v976_v9, %v975_v10 }
 0x420   : > { %v978_v12 = vld [vmem:[#allocation6 + $0x78] sm:$0xff] }
 0x421   : > { %1390 = vmatpush1.bf16.msra.mxu0 %v1389_v8  ;;  %v1395_v15 = vpack.c.bf16 %v978_v12, %v977_v14 }
 0x422   : > { %1391 = vmatprep.subr.bf16.mxu0 %v1580_v6 }
 0x425   : > { %1393 = vmatpush1.bf16.msra.mxu0 %v1392_v11  ;;  %v980_v16 = vld [vmem:[#allocation6 + $0x88] sm:$0xff] }
 0x426   : > { %1394 = vmatprep.subr.bf16.mxu0 %v1580_v6  ;;  %v1398_v18 = vpack.c.bf16 %v980_v16, %v979_v17 }
 0x429   : > { %1396 = vmatpush1.bf16.msra.mxu0 %v1395_v15 }
 0x42a   : > { %1397 = vmatprep.subr.bf16.mxu0 %v1580_v6 }
 0x42d   : > { %1399 = vmatpush1.bf16.msra.mxu0 %v1398_v18 }
 0x430   : > { %1055 = vmatmul.mubr.f32.vlgmr.msra.gmra.mrb[4].mxu0 %v961_v20 }
 0x503   : > { %v1056_v25 = vpop.f32.mrb[4].mxu0 }
 0x504   : > { %v1057_v13 = vadd.f32 %v1056_v25, %v985_v23  ;;  %v1058_v26 = vpop.f32.mrb[5].mxu0 }
 0x506   : > { %v1060_v32 = vmax.f32 %v1057_v13, 0.0 }
 0x508   : > { %1063 = vst.msk [vmem:[#allocation7] sm:$0xff] %vm796_vm0, %v1060_v32 }
 0x50f   : > { %v1064_v43 = vld [vmem:[#allocation7] sm:$0xff] }
 0x510   : > { %1066 = vrot.lane.b32.xlu1 %v1064_v43, %s1568_s29  ;;  %s291_s29 = scalar_lea.vmem %s1991_s7, %s1238_s22 }
 0x582   : > { %v1067_v45 = vpop.permute.xlu1 %1066 }
 0x583   : > { %v1069_v19 = vmax.f32 %v1064_v43, %v1067_v45 }
 0x585   : > { %1071 = vrot.lane.b32.xlu0 %v1069_v19, %s1578_s23 }
 0x5f7   : > { %v1072_v22 = vpop.permute.xlu0 %1071 }
 0x5f8   : > { %v1074_v46 = vmax.f32 %v1069_v19, %v1072_v22 }
 0x5fa   : > { %1315 = vmatmul.mubr.msk.f32.vlgmr.msra.gmra.mrb[4].mxu1 %vm796_vm0, %v1074_v46 }
 0x6cd   : > { %v1152_v21 = vpop.f32.mrb[4].mxu1 }
 0x6ce   : > { %1156 = vst.msk [vmem:[%s291_s29] sm:$0xff] %vm344_vm3, %v1152_v21  ;;  %v1316_v6 = vpop.f32.mrb[5].mxu1 }
 0x6cf PF: > { %s18_s24 = sadd.s32 1, %s1558_s24  }
 0x6d0   : > { %p15_p3 = scmp.ge.s32.totalorder %s18_s24, 4  }
 0x6d2   :  { %17 = sbr.rel (!%p15_p3) target bundleno = 1 (0x1), region = 83 }
 0x6d9   :  { %1176 = vsyncpa [#allocation9], 1 }
 0x6da   :  { %1178 = vsyncpa [#allocation9 + $0x1], 1 }

</bundles_post_ra>
